<compile_context>
chip_gen: v7x
topology: tpu7x:2x2x1
jax: 0.10.0
libtpu: 0.0.40
codegen_flags: <defaults>
</compile_context>

<pallas_src>
import functools

import jax
import jax.numpy as jnp
from jax import lax
from jax.experimental import pallas as pl
from jax.experimental.pallas import tpu as pltpu

# Fits v7x's 64 MiB physical VMEM and is well under v5e/v6e's 128 MiB.
_VMEM_LIMIT = 64 * 1024 * 1024


def _pick_tile(n, candidates=(512, 256, 128)):
    """Largest candidate tile that evenly divides n, else the full extent."""
    for t in candidates:
        if n % t == 0:
            return t
    return n


# ---------------------------------------------------------------------------
# Linear (x @ W + b), row-tiled.
# ---------------------------------------------------------------------------
def _linear_kernel(x_ref, w_ref, b_ref, o_ref):
    acc = jnp.dot(x_ref[...], w_ref[...], preferred_element_type=jnp.float32)
    o_ref[...] = (acc + b_ref[...]).astype(o_ref.dtype)


def _linear(x2d, w, b, out_dtype):
    """x2d: (M, K); w: (K, N); b: (1, N) float32 -> (M, N) in out_dtype."""
    M, K = x2d.shape
    N = w.shape[1]
    tm = _pick_tile(M)
    return pl.pallas_call(
        _linear_kernel,
        out_shape=jax.ShapeDtypeStruct((M, N), out_dtype),
        grid_spec=pltpu.PrefetchScalarGridSpec(
            num_scalar_prefetch=0,
            grid=(M // tm,),
            in_specs=[
                pl.BlockSpec((tm, K), lambda i: (i, 0)),
                # Weight/bias are grid-invariant (same block index every step),
                # so they are DMA'd only once.
                # TODO(synk): pipeline_mode=pl.Buffered(1) would also drop their
                # unused second VMEM buffer (matters for large E on v7x).
                pl.BlockSpec((K, N), lambda i: (0, 0)),
                pl.BlockSpec((1, N), lambda i: (0, 0)),
            ],
            out_specs=pl.BlockSpec((tm, N), lambda i: (i, 0)),
        ),
        compiler_params=pltpu.CompilerParams(
            dimension_semantics=("parallel",),
            vmem_limit_bytes=_VMEM_LIMIT,
        ),
    )(x2d, w, b)


# ---------------------------------------------------------------------------
# Flash attention (causal, online softmax).
# ---------------------------------------------------------------------------
def _flash_attn_kernel(q_ref, k_ref, v_ref, o_ref, m_ref, l_ref, acc_ref,
                       *, scale, tq, tk, approx_recip):
    qi = pl.program_id(1)
    ki = pl.program_id(2)

    @pl.when(ki == 0)
    def _init():
        m_ref[...] = jnp.full(m_ref.shape, -jnp.inf, dtype=m_ref.dtype)
        l_ref[...] = jnp.zeros(l_ref.shape, dtype=l_ref.dtype)
        acc_ref[...] = jnp.zeros(acc_ref.shape, dtype=acc_ref.dtype)

    # Causal tile skipping: KV tiles strictly above the diagonal contribute
    # nothing (their DMAs are also elided because the kv index_map clamps the
    # block index to the diagonal tile for ki > qi).
    @pl.when(ki <= qi)
    def _compute():
        q = q_ref[0]                                  # (tq, D)
        k = k_ref[0]                                  # (tk, D)
        v = v_ref[0]                                  # (tk, D)

        # NT matmul: contract the last dims of both operands (no explicit k.T).
        s = lax.dot_general(q, k, (((1,), (1,)), ((), ())),
                            preferred_element_type=jnp.float32) * scale

        # Causal mask in global coordinates (only bites on the diagonal tile).
        row = qi * tq + lax.broadcasted_iota(jnp.int32, (tq, tk), 0)
        col = ki * tk + lax.broadcasted_iota(jnp.int32, (tq, tk), 1)
        s = jnp.where(col <= row, s, -jnp.inf)

        m_prev = m_ref[...]                           # (tq, 1)
        m_new = jnp.maximum(m_prev, jnp.max(s, axis=-1, keepdims=True))
        alpha = jnp.exp(m_prev - m_new)
        p = jnp.exp(s - m_new)                        # (tq, tk) fp32

        l_ref[...] = alpha * l_ref[...] + jnp.sum(p, axis=-1, keepdims=True)
        acc_ref[...] = alpha * acc_ref[...] + jnp.dot(
            p.astype(v.dtype), v, preferred_element_type=jnp.float32)
        m_ref[...] = m_new

    # The diagonal tile is the last contributing KV tile for this query tile:
    # normalize the (tq, D) accumulator once (instead of dividing the (tq, tk)
    # probability matrix) and emit the output block.
    @pl.when(ki == qi)
    def _finalize():
        inv_l = pl.reciprocal(l_ref[...], approx=approx_recip)
        o_ref[0] = (acc_ref[...] * inv_l).astype(o_ref.dtype)


def _flash_attention(q, k, v, scale):
    """q, k, v: (B*H, N, D) -> causal attention output (B*H, N, D)."""
    BH, N, D = q.shape
    tq = tk = _pick_tile(N, candidates=(256, 128))
    nq, nk = N // tq, N // tk

    # Approximate (EUP) reciprocal only on the low-precision fast path; exact
    # divide in fp32 mode so results track the reference to ~1e-5.
    approx_recip = jnp.dtype(q.dtype).itemsize < 4

    kernel = functools.partial(_flash_attn_kernel, scale=scale, tq=tq, tk=tk,
                               approx_recip=approx_recip)

    q_spec = pl.BlockSpec((1, tq, D), lambda bh, qi, ki: (bh, qi, 0))
    kv_spec = pl.BlockSpec((1, tk, D),
                           lambda bh, qi, ki: (bh, jnp.minimum(ki, qi), 0))

    return pl.pallas_call(
        kernel,
        out_shape=jax.ShapeDtypeStruct((BH, N, D), q.dtype),
        grid_spec=pltpu.PrefetchScalarGridSpec(
            num_scalar_prefetch=0,
            grid=(BH, nq, nk),
            in_specs=[q_spec, kv_spec, kv_spec],
            out_specs=pl.BlockSpec((1, tq, D), lambda bh, qi, ki: (bh, qi, 0)),
            scratch_shapes=[
                pltpu.VMEM((tq, 1), jnp.float32),     # running row max
                pltpu.VMEM((tq, 1), jnp.float32),     # running denominator
                pltpu.VMEM((tq, D), jnp.float32),     # output accumulator
            ],
        ),
        compiler_params=pltpu.CompilerParams(
            dimension_semantics=("parallel", "parallel", "arbitrary"),
            vmem_limit_bytes=_VMEM_LIMIT,
        ),
    )(q, k, v)


# ---------------------------------------------------------------------------
# Full forward pass.
# ---------------------------------------------------------------------------
@functools.partial(jax.jit, static_argnames=("num_heads", "compute_dtype"))
def causal_self_attention(x, w_qkv, b_qkv, w_out, b_out, num_heads,
                          compute_dtype=jnp.float32):
    """CausalSelfAttention forward (eval mode).

    x: (B, N, E); w_qkv: (3E, E) torch layout; w_out: (E, E) torch layout.
    compute_dtype: dtype fed to the MXU matmuls (bfloat16 recommended on
    v5e/v6e/v7x; accumulation is always float32).
    """
    B, N, E = x.shape
    H = num_heads
    D = E // H
    scale = D ** (-0.5)
    out_dtype = x.dtype
    cd = compute_dtype

    x2d = x.reshape(B * N, E).astype(cd)
    wqkv_t = w_qkv.T.astype(cd)                       # (E, 3E)
    wo_t = w_out.T.astype(cd)                         # (E, E)
    bqkv = b_qkv.reshape(1, 3 * E).astype(jnp.float32)
    bo = b_out.reshape(1, E).astype(jnp.float32)

    # 1) QKV projection.
    qkv = _linear(x2d, wqkv_t, bqkv, cd)              # (B*N, 3E)

    # 2) Split into heads with a leading head axis: (B*H, N, D).
    qkv = qkv.reshape(B, N, 3, H, D)
    q = qkv[:, :, 0].transpose(0, 2, 1, 3).reshape(B * H, N, D)
    k = qkv[:, :, 1].transpose(0, 2, 1, 3).reshape(B * H, N, D)
    v = qkv[:, :, 2].transpose(0, 2, 1, 3).reshape(B * H, N, D)

    # TODO(synk): attn_dropout / proj_dropout are identity (eval mode); no RNG dropout.
    attn = _flash_attention(q, k, v, scale)           # (B*H, N, D)

    # 3) Merge heads back to (B*N, E) and apply the output projection.
    attn2d = attn.reshape(B, H, N, D).transpose(0, 2, 1, 3).reshape(B * N, E)
    out = _linear(attn2d.astype(cd), wo_t, bo, out_dtype)
    return out.reshape(B, N, E)


def reference(x, w_qkv, b_qkv, w_out, b_out, num_heads):
    """Plain-JAX reference matching the PyTorch forward (eval mode)."""
    B, N, E = x.shape
    D = E // num_heads
    scale = D ** (-0.5)
    qkv = x @ w_qkv.T + b_qkv                         # (B, N, 3E)
    q, k, v = jnp.split(qkv, 3, axis=-1)
    q = q.reshape(B, N, num_heads, D).transpose(0, 2, 1, 3)
    k = k.reshape(B, N, num_heads, D).transpose(0, 2, 1, 3)
    v = v.reshape(B, N, num_heads, D).transpose(0, 2, 1, 3)
    s = jnp.einsum('bhqd,bhkd->bhqk', q, k) * scale
    mask = jnp.tril(jnp.ones((N, N)))[None, None]
    s = jnp.where(mask == 0, -jnp.inf, s)
    p = jax.nn.softmax(s, axis=-1)
    o = jnp.einsum('bhqk,bhkd->bhqd', p, v).transpose(0, 2, 1, 3).reshape(B, N, E)
    return o @ w_out.T + b_out


if __name__ == "__main__":
    B, N, E, H = 2, 8, 32, 4

    key = jax.random.PRNGKey(0)
    kx, k1, k2, k3, k4 = jax.random.split(key, 5)
    x = jax.random.normal(kx, (B, N, E), dtype=jnp.float32)
    # torch nn.Linear weight layout: (out_features, in_features).
    w_qkv = jax.random.normal(k1, (3 * E, E), dtype=jnp.float32) * 0.1
    b_qkv = jax.random.normal(k2, (3 * E,), dtype=jnp.float32) * 0.1
    w_out = jax.random.normal(k3, (E, E), dtype=jnp.float32) * 0.1
    b_out = jax.random.normal(k4, (E,), dtype=jnp.float32) * 0.1

    ref = reference(x, w_qkv, b_qkv, w_out, b_out, H)

    # fp32 compute path: must match the reference tightly.
    out_f32 = causal_self_attention(x, w_qkv, b_qkv, w_out, b_out,
                                    num_heads=H, compute_dtype=jnp.float32)
    out_f32 = jax.block_until_ready(out_f32)
    assert out_f32.shape == (B, N, E)
    assert jnp.allclose(out_f32, ref, atol=1e-4, rtol=1e-4), "fp32 mismatch vs reference"

    # bf16 MXU-input path (fp32 accumulation): the fast path on v5e/v6e/v7x.
    out_bf16 = causal_self_attention(x, w_qkv, b_qkv, w_out, b_out,
                                     num_heads=H, compute_dtype=jnp.bfloat16)
    out_bf16 = jax.block_until_ready(out_bf16)
    assert jnp.allclose(out_bf16.astype(jnp.float32), ref,
                        atol=1e-1, rtol=1e-1), "bf16 mismatch vs reference"

    print("KERNEL_OK")
</pallas_src>

<mosaic_0001>
module attributes {stable_mosaic.version = 11 : i64} {
  func.func @_linear_kernel(%arg0: i32, %arg1: memref<16x32xf32, #tpu.memory_space<vmem>>, %arg2: memref<32x96xf32, #tpu.memory_space<vmem>>, %arg3: memref<1x96xf32, #tpu.memory_space<vmem>>, %arg4: memref<16x96xf32, #tpu.memory_space<vmem>>) attributes {dimension_semantics = [#tpu.dimension_semantics<parallel>], iteration_bounds = array<i64: 1>, scalar_prefetch = 0 : i64, scratch_operands = 0 : i64, tpu.core_type = #tpu.core_type<tc>, window_params = [{transform_indices = @transform_0, window_bounds = array<i64: 16, 32>}, {pipeline_mode = #tpu.pipeline_mode<synchronous>, transform_indices = @transform_1, window_bounds = array<i64: 32, 96>}, {pipeline_mode = #tpu.pipeline_mode<synchronous>, transform_indices = @transform_2, window_bounds = array<i64: 1, 96>}, {transform_indices = @transform_3, window_bounds = array<i64: 16, 96>}]} {
    %c0 = arith.constant 0 : index
    %c0_0 = arith.constant 0 : index
    %0 = vector.load %arg1[%c0, %c0_0] : memref<16x32xf32, #tpu.memory_space<vmem>>, vector<16x32xf32>
    %c0_1 = arith.constant 0 : index
    %c0_2 = arith.constant 0 : index
    %1 = vector.load %arg2[%c0_1, %c0_2] : memref<32x96xf32, #tpu.memory_space<vmem>>, vector<32x96xf32>
    %cst = arith.constant dense<0.000000e+00> : vector<16x96xf32>
    %2 = tpu.matmul %0, %1, %cst {dimension_numbers = #tpu.dot_dimension_numbers<[1], [0], [0], [1], [0, 0, 1, 1], [], []>} : vector<16x32xf32>, vector<32x96xf32>, vector<16x96xf32> -> vector<16x96xf32>
    %c0_3 = arith.constant 0 : index
    %c0_4 = arith.constant 0 : index
    %3 = vector.load %arg3[%c0_3, %c0_4] : memref<1x96xf32, #tpu.memory_space<vmem>>, vector<1x96xf32>
    %4 = vector.broadcast %3 : vector<1x96xf32> to vector<16x96xf32>
    %5 = arith.addf %2, %4 : vector<16x96xf32>
    %c0_5 = arith.constant 0 : index
    %c0_6 = arith.constant 0 : index
    %6 = vector.load %arg4[%c0_5, %c0_6] : memref<16x96xf32, #tpu.memory_space<vmem>>, vector<16x96xf32>
    tpu.vector_store %arg4[%c0_5, %c0_6], %5 {strides = array<i32>} : memref<16x96xf32, #tpu.memory_space<vmem>>, vector<16x96xf32>,
    return
  }
  func.func @transform_0(%arg0: i32) -> (i32, i32) {
    %c0_i32 = arith.constant 0 : i32
    %c0_i32_0 = arith.constant 0 : i32
    return %arg0, %c0_i32 : i32, i32
  }
  func.func @transform_1(%arg0: i32) -> (i32, i32) {
    %c0_i32 = arith.constant 0 : i32
    %c0_i32_0 = arith.constant 0 : i32
    %c0_i32_1 = arith.constant 0 : i32
    return %c0_i32, %c0_i32_0 : i32, i32
  }
  func.func @transform_2(%arg0: i32) -> (i32, i32) {
    %c0_i32 = arith.constant 0 : i32
    %c0_i32_0 = arith.constant 0 : i32
    %c0_i32_1 = arith.constant 0 : i32
    return %c0_i32, %c0_i32_0 : i32, i32
  }
  func.func @transform_3(%arg0: i32) -> (i32, i32) {
    %c0_i32 = arith.constant 0 : i32
    %c0_i32_0 = arith.constant 0 : i32
    return %arg0, %c0_i32 : i32, i32
  }
}

module attributes {stable_mosaic.version = 11 : i64} {
  func.func @_flash_attn_kernel(%arg0: i32, %arg1: i32, %arg2: i32, %arg3: memref<1x8x8xf32, #tpu.memory_space<vmem>>, %arg4: memref<1x8x8xf32, #tpu.memory_space<vmem>>, %arg5: memref<1x8x8xf32, #tpu.memory_space<vmem>>, %arg6: memref<1x8x8xf32, #tpu.memory_space<vmem>>, %arg7: memref<8x1xf32, #tpu.memory_space<vmem>>, %arg8: memref<8x1xf32, #tpu.memory_space<vmem>>, %arg9: memref<8x8xf32, #tpu.memory_space<vmem>>) attributes {dimension_semantics = [#tpu.dimension_semantics<parallel>, #tpu.dimension_semantics<parallel>, #tpu.dimension_semantics<arbitrary>], iteration_bounds = array<i64: 8, 1, 1>, scalar_prefetch = 0 : i64, scratch_operands = 3 : i64, tpu.core_type = #tpu.core_type<tc>, window_params = [{transform_indices = @transform_0, window_bounds = array<i64: 1, 8, 8>}, {transform_indices = @transform_1, window_bounds = array<i64: 1, 8, 8>}, {transform_indices = @transform_2, window_bounds = array<i64: 1, 8, 8>}, {transform_indices = @transform_3, window_bounds = array<i64: 1, 8, 8>}]} {
    %c0_i32 = arith.constant 0 : i32
    %0 = arith.cmpi eq, %arg2, %c0_i32 : i32
    %1 = arith.extui %0 : i1 to i32
    %c0_i32_0 = arith.constant 0 : i32
    %2 = arith.cmpi ne, %1, %c0_i32_0 : i32
    scf.if %2 {
      %cst = arith.constant 0xFF800000 : f32
      %9 = vector.broadcast %cst : f32 to vector<8x1xf32>
      %c0 = arith.constant 0 : index
      %c0_3 = arith.constant 0 : index
      %10 = vector.load %arg7[%c0, %c0_3] : memref<8x1xf32, #tpu.memory_space<vmem>>, vector<8x1xf32>
      tpu.vector_store %arg7[%c0, %c0_3], %9 {strides = array<i32>} : memref<8x1xf32, #tpu.memory_space<vmem>>, vector<8x1xf32>,
      %cst_4 = arith.constant 0.000000e+00 : f32
      %11 = vector.broadcast %cst_4 : f32 to vector<8x1xf32>
      %c0_5 = arith.constant 0 : index
      %c0_6 = arith.constant 0 : index
      %12 = vector.load %arg8[%c0_5, %c0_6] : memref<8x1xf32, #tpu.memory_space<vmem>>, vector<8x1xf32>
      tpu.vector_store %arg8[%c0_5, %c0_6], %11 {strides = array<i32>} : memref<8x1xf32, #tpu.memory_space<vmem>>, vector<8x1xf32>,
      %cst_7 = arith.constant 0.000000e+00 : f32
      %13 = vector.broadcast %cst_7 : f32 to vector<8x8xf32>
      %c0_8 = arith.constant 0 : index
      %c0_9 = arith.constant 0 : index
      %14 = vector.load %arg9[%c0_8, %c0_9] : memref<8x8xf32, #tpu.memory_space<vmem>>, vector<8x8xf32>
      tpu.vector_store %arg9[%c0_8, %c0_9], %13 {strides = array<i32>} : memref<8x8xf32, #tpu.memory_space<vmem>>, vector<8x8xf32>,
    } else {
    }
    %3 = arith.cmpi sle, %arg2, %arg1 : i32
    %4 = arith.extui %3 : i1 to i32
    %c0_i32_1 = arith.constant 0 : i32
    %5 = arith.cmpi ne, %4, %c0_i32_1 : i32
    scf.if %5 {
      %c0 = arith.constant 0 : index
      %c0_3 = arith.constant 0 : index
      %c0_4 = arith.constant 0 : index
      %9 = vector.load %arg3[%c0, %c0_3, %c0_4] : memref<1x8x8xf32, #tpu.memory_space<vmem>>, vector<1x8x8xf32>
      %10 = vector.shape_cast %9 : vector<1x8x8xf32> to vector<8x8xf32>
      %c0_5 = arith.constant 0 : index
      %c0_6 = arith.constant 0 : index
      %c0_7 = arith.constant 0 : index
      %11 = vector.load %arg4[%c0_5, %c0_6, %c0_7] : memref<1x8x8xf32, #tpu.memory_space<vmem>>, vector<1x8x8xf32>
      %12 = vector.shape_cast %11 : vector<1x8x8xf32> to vector<8x8xf32>
      %c0_8 = arith.constant 0 : index
      %c0_9 = arith.constant 0 : index
      %c0_10 = arith.constant 0 : index
      %13 = vector.load %arg5[%c0_8, %c0_9, %c0_10] : memref<1x8x8xf32, #tpu.memory_space<vmem>>, vector<1x8x8xf32>
      %14 = vector.shape_cast %13 : vector<1x8x8xf32> to vector<8x8xf32>
      %cst = arith.constant dense<0.000000e+00> : vector<8x8xf32>
      %15 = tpu.matmul %10, %12, %cst {dimension_numbers = #tpu.dot_dimension_numbers<[1], [1], [0], [0], [0, 0, 1, 0], [], []>} : vector<8x8xf32>, vector<8x8xf32>, vector<8x8xf32> -> vector<8x8xf32>
      %cst_11 = arith.constant 0.353553385 : f32
      %16 = vector.broadcast %cst_11 : f32 to vector<8x8xf32>
      %17 = arith.mulf %15, %16 : vector<8x8xf32>
      %c8_i32 = arith.constant 8 : i32
      %18 = arith.muli %arg1, %c8_i32 : i32
      %19 = tpu.iota {dimensions = array<i32: 0>} : vector<8x8xi32>
      %20 = vector.broadcast %18 : i32 to vector<8x8xi32>
      %21 = arith.addi %20, %19 : vector<8x8xi32>
      %c8_i32_12 = arith.constant 8 : i32
      %22 = arith.muli %arg2, %c8_i32_12 : i32
      %23 = tpu.iota {dimensions = array<i32: 1>} : vector<8x8xi32>
      %24 = vector.broadcast %22 : i32 to vector<8x8xi32>
      %25 = arith.addi %24, %23 : vector<8x8xi32>
      %26 = arith.cmpi sle, %25, %21 : vector<8x8xi32>
      %cst_13 = arith.constant 0xFF800000 : f32
      %27 = vector.broadcast %cst_13 : f32 to vector<8x8xf32>
      %28 = arith.select %26, %17, %27 : vector<8x8xi1>, vector<8x8xf32>
      %c0_14 = arith.constant 0 : index
      %c0_15 = arith.constant 0 : index
      %29 = vector.load %arg7[%c0_14, %c0_15] : memref<8x1xf32, #tpu.memory_space<vmem>>, vector<8x1xf32>
      %cst_16 = arith.constant dense<0xFF800000> : vector<8xf32>
      %30 = vector.multi_reduction <maximumf>, %28, %cst_16 [1] : vector<8x8xf32> to vector<8xf32>
      %31 = vector.shape_cast %30 : vector<8xf32> to vector<8x1xf32>
      %32 = arith.maximumf %29, %31 : vector<8x1xf32>
      %33 = arith.subf %29, %32 : vector<8x1xf32>
      %34 = math.exp %33 : vector<8x1xf32>
      %35 = vector.broadcast %32 : vector<8x1xf32> to vector<8x8xf32>
      %36 = arith.subf %28, %35 : vector<8x8xf32>
      %37 = math.exp %36 : vector<8x8xf32>
      %c0_17 = arith.constant 0 : index
      %c0_18 = arith.constant 0 : index
      %38 = vector.load %arg8[%c0_17, %c0_18] : memref<8x1xf32, #tpu.memory_space<vmem>>, vector<8x1xf32>
      %39 = arith.mulf %34, %38 : vector<8x1xf32>
      %cst_19 = arith.constant dense<0.000000e+00> : vector<8xf32>
      %40 = vector.multi_reduction <add>, %37, %cst_19 [1] : vector<8x8xf32> to vector<8xf32>
      %41 = vector.shape_cast %40 : vector<8xf32> to vector<8x1xf32>
      %42 = arith.addf %39, %41 : vector<8x1xf32>
      %c0_20 = arith.constant 0 : index
      %c0_21 = arith.constant 0 : index
      %43 = vector.load %arg8[%c0_20, %c0_21] : memref<8x1xf32, #tpu.memory_space<vmem>>, vector<8x1xf32>
      tpu.vector_store %arg8[%c0_20, %c0_21], %42 {strides = array<i32>} : memref<8x1xf32, #tpu.memory_space<vmem>>, vector<8x1xf32>,
      %c0_22 = arith.constant 0 : index
      %c0_23 = arith.constant 0 : index
      %44 = vector.load %arg9[%c0_22, %c0_23] : memref<8x8xf32, #tpu.memory_space<vmem>>, vector<8x8xf32>
      %45 = vector.broadcast %34 : vector<8x1xf32> to vector<8x8xf32>
      %46 = arith.mulf %45, %44 : vector<8x8xf32>
      %cst_24 = arith.constant dense<0.000000e+00> : vector<8x8xf32>
      %47 = tpu.matmul %37, %14, %cst_24 {dimension_numbers = #tpu.dot_dimension_numbers<[1], [0], [0], [1], [0, 0, 1, 1], [], []>} : vector<8x8xf32>, vector<8x8xf32>, vector<8x8xf32> -> vector<8x8xf32>
      %48 = arith.addf %46, %47 : vector<8x8xf32>
      %c0_25 = arith.constant 0 : index
      %c0_26 = arith.constant 0 : index
      %49 = vector.load %arg9[%c0_25, %c0_26] : memref<8x8xf32, #tpu.memory_space<vmem>>, vector<8x8xf32>
      tpu.vector_store %arg9[%c0_25, %c0_26], %48 {strides = array<i32>} : memref<8x8xf32, #tpu.memory_space<vmem>>, vector<8x8xf32>,
      %c0_27 = arith.constant 0 : index
      %c0_28 = arith.constant 0 : index
      %50 = vector.load %arg7[%c0_27, %c0_28] : memref<8x1xf32, #tpu.memory_space<vmem>>, vector<8x1xf32>
      tpu.vector_store %arg7[%c0_27, %c0_28], %32 {strides = array<i32>} : memref<8x1xf32, #tpu.memory_space<vmem>>, vector<8x1xf32>,
    } else {
    }
    %6 = arith.cmpi eq, %arg2, %arg1 : i32
    %7 = arith.extui %6 : i1 to i32
    %c0_i32_2 = arith.constant 0 : i32
    %8 = arith.cmpi ne, %7, %c0_i32_2 : i32
    scf.if %8 {
      %c0 = arith.constant 0 : index
      %c0_3 = arith.constant 0 : index
      %9 = vector.load %arg8[%c0, %c0_3] : memref<8x1xf32, #tpu.memory_space<vmem>>, vector<8x1xf32>
      %10 = tpu.reciprocal %9 : vector<8x1xf32> -> vector<8x1xf32>
      %c0_4 = arith.constant 0 : index
      %c0_5 = arith.constant 0 : index
      %11 = vector.load %arg9[%c0_4, %c0_5] : memref<8x8xf32, #tpu.memory_space<vmem>>, vector<8x8xf32>
      %12 = vector.broadcast %10 : vector<8x1xf32> to vector<8x8xf32>
      %13 = arith.mulf %11, %12 : vector<8x8xf32>
      %c0_6 = arith.constant 0 : index
      %c0_7 = arith.constant 0 : index
      %c0_8 = arith.constant 0 : index
      %14 = vector.load %arg6[%c0_6, %c0_7, %c0_8] : memref<1x8x8xf32, #tpu.memory_space<vmem>>, vector<1x8x8xf32>
      %15 = vector.shape_cast %14 : vector<1x8x8xf32> to vector<8x8xf32>
      %16 = vector.shape_cast %13 : vector<8x8xf32> to vector<1x8x8xf32>
      tpu.vector_store %arg6[%c0_6, %c0_7, %c0_8], %16 {strides = array<i32>} : memref<1x8x8xf32, #tpu.memory_space<vmem>>, vector<1x8x8xf32>,
    } else {
    }
    return
  }
  func.func @transform_0(%arg0: i32, %arg1: i32, %arg2: i32) -> (i32, i32, i32) {
    %c0_i32 = arith.constant 0 : i32
    %c0_i32_0 = arith.constant 0 : i32
    return %arg0, %arg1, %c0_i32 : i32, i32, i32
  }
  func.func @transform_1(%arg0: i32, %arg1: i32, %arg2: i32) -> (i32, i32, i32) {
    %0 = arith.minsi %arg2, %arg1 : i32
    %c0_i32 = arith.constant 0 : i32
    %c0_i32_0 = arith.constant 0 : i32
    return %arg0, %0, %c0_i32 : i32, i32, i32
  }
  func.func @transform_2(%arg0: i32, %arg1: i32, %arg2: i32) -> (i32, i32, i32) {
    %0 = arith.minsi %arg2, %arg1 : i32
    %c0_i32 = arith.constant 0 : i32
    %c0_i32_0 = arith.constant 0 : i32
    return %arg0, %0, %c0_i32 : i32, i32, i32
  }
  func.func @transform_3(%arg0: i32, %arg1: i32, %arg2: i32) -> (i32, i32, i32) {
    %c0_i32 = arith.constant 0 : i32
    %c0_i32_0 = arith.constant 0 : i32
    return %arg0, %arg1, %c0_i32 : i32, i32, i32
  }
}

module attributes {stable_mosaic.version = 11 : i64} {
  func.func @_linear_kernel(%arg0: i32, %arg1: memref<16x32xf32, #tpu.memory_space<vmem>>, %arg2: memref<32x32xf32, #tpu.memory_space<vmem>>, %arg3: memref<1x32xf32, #tpu.memory_space<vmem>>, %arg4: memref<16x32xf32, #tpu.memory_space<vmem>>) attributes {dimension_semantics = [#tpu.dimension_semantics<parallel>], iteration_bounds = array<i64: 1>, scalar_prefetch = 0 : i64, scratch_operands = 0 : i64, tpu.core_type = #tpu.core_type<tc>, window_params = [{transform_indices = @transform_0, window_bounds = array<i64: 16, 32>}, {pipeline_mode = #tpu.pipeline_mode<synchronous>, transform_indices = @transform_1, window_bounds = array<i64: 32, 32>}, {pipeline_mode = #tpu.pipeline_mode<synchronous>, transform_indices = @transform_2, window_bounds = array<i64: 1, 32>}, {transform_indices = @transform_3, window_bounds = array<i64: 16, 32>}]} {
    %c0 = arith.constant 0 : index
    %c0_0 = arith.constant 0 : index
    %0 = vector.load %arg1[%c0, %c0_0] : memref<16x32xf32, #tpu.memory_space<vmem>>, vector<16x32xf32>
    %c0_1 = arith.constant 0 : index
    %c0_2 = arith.constant 0 : index
    %1 = vector.load %arg2[%c0_1, %c0_2] : memref<32x32xf32, #tpu.memory_space<vmem>>, vector<32x32xf32>
    %cst = arith.constant dense<0.000000e+00> : vector<16x32xf32>
    %2 = tpu.matmul %0, %1, %cst {dimension_numbers = #tpu.dot_dimension_numbers<[1], [0], [0], [1], [0, 0, 1, 1], [], []>} : vector<16x32xf32>, vector<32x32xf32>, vector<16x32xf32> -> vector<16x32xf32>
    %c0_3 = arith.constant 0 : index
    %c0_4 = arith.constant 0 : index
    %3 = vector.load %arg3[%c0_3, %c0_4] : memref<1x32xf32, #tpu.memory_space<vmem>>, vector<1x32xf32>
    %4 = vector.broadcast %3 : vector<1x32xf32> to vector<16x32xf32>
    %5 = arith.addf %2, %4 : vector<16x32xf32>
    %c0_5 = arith.constant 0 : index
    %c0_6 = arith.constant 0 : index
    %6 = vector.load %arg4[%c0_5, %c0_6] : memref<16x32xf32, #tpu.memory_space<vmem>>, vector<16x32xf32>
    tpu.vector_store %arg4[%c0_5, %c0_6], %5 {strides = array<i32>} : memref<16x32xf32, #tpu.memory_space<vmem>>, vector<16x32xf32>,
    return
  }
  func.func @transform_0(%arg0: i32) -> (i32, i32) {
    %c0_i32 = arith.constant 0 : i32
    %c0_i32_0 = arith.constant 0 : i32
    return %arg0, %c0_i32 : i32, i32
  }
  func.func @transform_1(%arg0: i32) -> (i32, i32) {
    %c0_i32 = arith.constant 0 : i32
    %c0_i32_0 = arith.constant 0 : i32
    %c0_i32_1 = arith.constant 0 : i32
    return %c0_i32, %c0_i32_0 : i32, i32
  }
  func.func @transform_2(%arg0: i32) -> (i32, i32) {
    %c0_i32 = arith.constant 0 : i32
    %c0_i32_0 = arith.constant 0 : i32
    %c0_i32_1 = arith.constant 0 : i32
    return %c0_i32, %c0_i32_0 : i32, i32
  }
  func.func @transform_3(%arg0: i32) -> (i32, i32) {
    %c0_i32 = arith.constant 0 : i32
    %c0_i32_0 = arith.constant 0 : i32
    return %arg0, %c0_i32 : i32, i32
  }
}

</mosaic_0001>

<bundles_post_ra>
// kernel: causal_self_attention.5
= control target key start
LH: loop header
LB: loop body
LE: loop exit
PB: predicated region body
PF: predicated region fallthrough
CT: control target
= control target key end

     0   :  { %8 = vsyncpa [#allocation3], 0  ;;  %s391_s0 = inlined_call_operand.hbm [shape: f32[16,32], index: 0, kind: input, shape index: {}]   ;;  %s392_s1 = inlined_call_operand.hbm [shape: f32[32,32], index: 1, kind: input, shape index: {}]   ;;  %s393_s2 = inlined_call_operand.hbm [shape: f32[1,32], index: 2, kind: input, shape index: {}]   ;;  %s394_s3 = inlined_call_operand.hbm [shape: f32[16,32], index: 3, kind: output, shape index: {}]  }
   0x1   :  { %9 = vsyncpa [#allocation6], 0 }
   0x2   :  { %10 = vsyncpa [#allocation4], 0  ;;  %s297_s12 = smov [#allocation5]   ;;  %s298_s14 = smov [#allocation2]  }
   0x3   :  { %s28_s13 = sshll.u32 %s297_s12, 4  ;;  %s16_s15 = sshll.u32 %s298_s14, 4  ;;  %s29_s13 = int_to_ptr.vmem [resolvable:$true] %s28_s13  ;;  %s323_s15 = int_to_ptr.vmem [resolvable:$true] %s16_s15 }
   0x4   :  { %s203_s18 = scalar_lea.hbm %s392_s1, 512 }
   0x5   :  { %p204_p0 = scmp.ne.s32.totalorder %s392_s1, %s203_s18  ;;  %p207_p1 = scmp.lt.u32.totalorder %s203_s18, %s392_s1 }
   0x7   :  { %p209_p2 = pnand %p207_p1, %p204_p0 }
   0x9   :  { %212 = shalt.err (!%p209_p2)
}
   0xa   :  { %s213_s23 = scalar_lea.vmem %s29_s13, 512  ;;  %p218_p4 = scmp.lt.s32.totalorder %s29_s13, %s29_s13 }
   0xb   :  { %p214_p3 = scmp.ne.s32.totalorder %s29_s13, %s213_s23  ;;  %p219_p5 = scmp.lt.s32.totalorder %s213_s23, %s213_s23 }
   0xd   :  { %p220_p6 = por %p219_p5, %p218_p4 }
   0xf   :  { %p221_p7 = pnand %p220_p6, %p214_p3 }
  0x11   :  { %224 = shalt.err (!%p221_p7)
}
  0x12   :  { %s299_s24 = smov 128   ;;  %s300_s25 = smov 8  }
  0x13   :  { %34 = dma.hbm_to_vmem [thread:$0]  %s392_s1, 512, %s29_s13, [#allocation6], %s299_s24, %s299_s24, %s300_s25  }
  0x14   :  { %s225_s30 = scalar_lea.hbm %s391_s0, 256 }
  0x15   :  { %p226_p8 = scmp.ne.s32.totalorder %s391_s0, %s225_s30  ;;  %p229_p9 = scmp.lt.u32.totalorder %s225_s30, %s391_s0 }
  0x17   :  { %p231_p10 = pnand %p229_p9, %p226_p8 }
  0x19   :  { %234 = shalt.err (!%p231_p10)
}
  0x1a   :  { %s235_s8 = scalar_lea.vmem %s323_s15, 256  ;;  %p240_p12 = scmp.lt.s32.totalorder %s323_s15, %s323_s15 }
  0x1b   :  { %p236_p11 = scmp.ne.s32.totalorder %s323_s15, %s235_s8  ;;  %p241_p13 = scmp.lt.s32.totalorder %s235_s8, %s235_s8 }
  0x1d   :  { %p242_p0 = por %p241_p13, %p240_p12 }
  0x1f   :  { %p243_p1 = pnand %p242_p0, %p236_p11 }
  0x21   :  { %246 = shalt.err (!%p243_p1)
}
  0x22   :  { %22 = dma.hbm_to_vmem [thread:$0]  %s391_s0, 256, %s323_s15, [#allocation3], %s299_s24, %s299_s24, %s300_s25  }
  0x23   :  { %s301_s10 = smov [#allocation7]   ;;  %s247_s14 = scalar_lea.hbm %s393_s2, 16 }
  0x24   :  { %s41_s11 = sshll.u32 %s301_s10, 4  ;;  %p248_p2 = scmp.ne.s32.totalorder %s393_s2, %s247_s14  ;;  %s42_s11 = int_to_ptr.vmem [resolvable:$true] %s41_s11 }
  0x25   :  { %p251_p3 = scmp.lt.u32.totalorder %s247_s14, %s393_s2 }
  0x27   :  { %p253_p4 = pnand %p251_p3, %p248_p2 }
  0x29   :  { %256 = shalt.err (!%p253_p4)
}
  0x2a   :  { %s257_s20 = scalar_lea.vmem %s42_s11, 16  ;;  %s261_s0 = scalar_lea.vmem %s42_s11, 32 }
  0x2b   :  { %p258_p5 = scmp.ne.s32.totalorder %s42_s11, %s257_s20  ;;  %p262_p6 = scmp.lt.s32.totalorder %s42_s11, %s42_s11 }
  0x2c   :  { %p263_p7 = scmp.lt.s32.totalorder %s261_s0, %s257_s20 }
  0x2e   :  { %p264_p8 = por %p263_p7, %p262_p6 }
  0x30   :  { %p265_p9 = pnand %p264_p8, %p258_p5 }
  0x32   :  { %268 = shalt.err (!%p265_p9)
}
  0x33   :  { %44 = dma.hbm_to_vmem [thread:$0]  %s393_s2, 16, %s42_s11, [#allocation6]  }
  0x34   :  { %291 = dma.done.wait [#allocation3], 256  }
  0x35   :  { %292 = vsyncadd [#allocation3], 4294967040 }
  0x36   :  { %293 = dma.done.wait [#allocation6], 528  }
  0x37   :  { %294 = vsyncadd [#allocation6], 4294966768  ;;  %vm67_vm0 = vcmask 261120   ;;  %v56_v0 = vld [vmem:[#allocation5] sm:$0xff]  ;;  %v57_v1 = vld [vmem:[#allocation5 + $0x8] sm:$0xff]  ;;  %s302_s2 = smov [#allocation8]  }
  0x38   :  { %v58_v2 = vld [vmem:[#allocation5 + $0x10] sm:$0xff]  ;;  %v189_v3 = vpack.c.bf16 %v57_v1, %v56_v0  ;;  %v59_v4 = vld [vmem:[#allocation5 + $0x18] sm:$0xff]  ;;  %v169_v8 = vld [vmem:[#allocation7] ss:$0 sm:$0xff]  ;;  %s156_s22 = sshll.u32 %s302_s2, 4  ;;  %s157_s22 = int_to_ptr.vmem [resolvable:$true] %s156_s22 }
  0x39   :  { %v54_v5 = vld [vmem:[#allocation2] sm:$0xff]  ;;  %v193_v6 = vpack.c.bf16 %v59_v4, %v58_v2  ;;  %v55_v7 = vld [vmem:[#allocation2 + $0x8] sm:$0xff]  ;;  %s269_s23 = scalar_lea.vmem %s157_s22, 256  ;;  %p274_p11 = scmp.lt.s32.totalorder %s157_s22, %s157_s22 }
  0x3a   :  { %186 = vmatprep.mubr.msk.f32.mxu0 %vm67_vm0, %v54_v5  ;;  %190 = vmatprep.subr.bf16.mxu0 %v189_v3  ;;  %p270_p10 = scmp.ne.s32.totalorder %s157_s22, %s269_s23  ;;  %p275_p12 = scmp.lt.s32.totalorder %s269_s23, %s269_s23 }
  0x3b   :  { %192 = vmatpush3.bf16.msra.mxu0 %v189_v3 }
  0x3c   :  { %194 = vmatprep.subr.bf16.mxu0 %v193_v6  ;;  %p276_p13 = por %p275_p12, %p274_p11 }
  0x3e   :  { %p277_p0 = pnand %p276_p13, %p270_p10 }
  0x3f   :  { %196 = vmatpush3.bf16.msra.mxu0 %v193_v6 }
  0x42   :  { %187 = vmatmul.mubr.msk.f32.vlgmr.msra.gmra.mrb[0].mxu0 %vm67_vm0, %v55_v7 }
 0x115   :  { %v188_v9 = vpop.f32.mrb[0].mxu0 }
 0x116   :  { %v146_v10 = vadd.f32 %v188_v9, %v169_v8  ;;  %v140_v11 = vpop.f32.mrb[1].mxu0 }
 0x117   :  { %v141_v12 = vadd.f32 %v169_v8, %v140_v11 }
 0x118   :  { %150 = vst.msk [vmem:[#allocation8 + $0x8] sm:$0xff] %vm67_vm0, %v146_v10 }
 0x119   :  { %149 = vst.msk [vmem:[#allocation8] sm:$0xff] %vm67_vm0, %v141_v12 }
 0x11a   :  { %280 = shalt.err (!%p277_p0)
}
 0x11b   :  { %s281_s28 = scalar_lea.hbm %s394_s3, 256 }
 0x11c   :  { %p282_p1 = scmp.ne.s32.totalorder %s394_s3, %s281_s28  ;;  %p285_p2 = scmp.lt.u32.totalorder %s281_s28, %s394_s3 }
 0x11e   :  { %p287_p3 = pnand %p285_p2, %p282_p1 }
 0x120   :  { %290 = shalt.err (!%p287_p3)
}
 0x121   :  { %162 = dma.vmem_to_hbm [thread:$0]  %s157_s22, 256, %s394_s3, [#allocation4], %s299_s24, %s299_s24, %s300_s25  }
 0x122   :  { %295 = dma.done.wait [#allocation4], 256  }
 0x123   :  { %296 = vsyncadd [#allocation4], 4294967040 }
 0x124   :  { %166 = vsyncpa [#allocation3], 1 }
 0x125   :  { %167 = vsyncpa [#allocation6], 1 }
 0x126   :  { %168 = vsyncpa [#allocation4], 1 }

// kernel: causal_self_attention.3
= control target key start
LH: loop header
LB: loop body
LE: loop exit
PB: predicated region body
PF: predicated region fallthrough
CT: control target
= control target key end

     0   :  { %8 = vsyncpa [#allocation3], 0  ;;  %s388_s0 = inlined_call_operand.hbm [shape: f32[16,32], index: 0, kind: input, shape index: {}]   ;;  %s389_s1 = inlined_call_operand.hbm [shape: f32[32,96], index: 1, kind: input, shape index: {}]   ;;  %s390_s2 = inlined_call_operand.hbm [shape: f32[1,96], index: 2, kind: input, shape index: {}]   ;;  %s391_s3 = inlined_call_operand.hbm [shape: f32[16,96], index: 3, kind: output, shape index: {}]  }
   0x1   :  { %9 = vsyncpa [#allocation6], 0 }
   0x2   :  { %10 = vsyncpa [#allocation4], 0  ;;  %s298_s12 = smov [#allocation5]   ;;  %s299_s14 = smov [#allocation2]  }
   0x3   :  { %s28_s13 = sshll.u32 %s298_s12, 4  ;;  %s16_s15 = sshll.u32 %s299_s14, 4  ;;  %s29_s13 = int_to_ptr.vmem [resolvable:$true] %s28_s13  ;;  %s324_s15 = int_to_ptr.vmem [resolvable:$true] %s16_s15 }
   0x4   :  { %s204_s18 = scalar_lea.hbm %s389_s1, 512 }
   0x5   :  { %p205_p0 = scmp.ne.s32.totalorder %s389_s1, %s204_s18  ;;  %p208_p1 = scmp.lt.u32.totalorder %s204_s18, %s389_s1 }
   0x7   :  { %p210_p2 = pnand %p208_p1, %p205_p0 }
   0x9   :  { %213 = shalt.err (!%p210_p2)
}
   0xa   :  { %s214_s23 = scalar_lea.vmem %s29_s13, 512  ;;  %p219_p4 = scmp.lt.s32.totalorder %s29_s13, %s29_s13 }
   0xb   :  { %p215_p3 = scmp.ne.s32.totalorder %s29_s13, %s214_s23  ;;  %p220_p5 = scmp.lt.s32.totalorder %s214_s23, %s214_s23 }
   0xd   :  { %p221_p6 = por %p220_p5, %p219_p4 }
   0xf   :  { %p222_p7 = pnand %p221_p6, %p215_p3 }
  0x11   :  { %225 = shalt.err (!%p222_p7)
}
  0x12   :  { %s300_s24 = smov 128   ;;  %s301_s25 = smov 8  }
  0x13   :  { %34 = dma.hbm_to_vmem [thread:$0]  %s389_s1, 512, %s29_s13, [#allocation6], %s300_s24, %s300_s24, %s301_s25  }
  0x14   :  { %s226_s30 = scalar_lea.hbm %s388_s0, 256 }
  0x15   :  { %p227_p8 = scmp.ne.s32.totalorder %s388_s0, %s226_s30  ;;  %p230_p9 = scmp.lt.u32.totalorder %s226_s30, %s388_s0 }
  0x17   :  { %p232_p10 = pnand %p230_p9, %p227_p8 }
  0x19   :  { %235 = shalt.err (!%p232_p10)
}
  0x1a   :  { %s236_s8 = scalar_lea.vmem %s324_s15, 256  ;;  %p241_p12 = scmp.lt.s32.totalorder %s324_s15, %s324_s15 }
  0x1b   :  { %p237_p11 = scmp.ne.s32.totalorder %s324_s15, %s236_s8  ;;  %p242_p13 = scmp.lt.s32.totalorder %s236_s8, %s236_s8 }
  0x1d   :  { %p243_p0 = por %p242_p13, %p241_p12 }
  0x1f   :  { %p244_p1 = pnand %p243_p0, %p237_p11 }
  0x21   :  { %247 = shalt.err (!%p244_p1)
}
  0x22   :  { %22 = dma.hbm_to_vmem [thread:$0]  %s388_s0, 256, %s324_s15, [#allocation3], %s300_s24, %s300_s24, %s301_s25  }
  0x23   :  { %s302_s10 = smov [#allocation7]   ;;  %s248_s14 = scalar_lea.hbm %s390_s2, 16 }
  0x24   :  { %s41_s11 = sshll.u32 %s302_s10, 4  ;;  %p249_p2 = scmp.ne.s32.totalorder %s390_s2, %s248_s14  ;;  %s42_s11 = int_to_ptr.vmem [resolvable:$true] %s41_s11 }
  0x25   :  { %p252_p3 = scmp.lt.u32.totalorder %s248_s14, %s390_s2 }
  0x27   :  { %p254_p4 = pnand %p252_p3, %p249_p2 }
  0x29   :  { %257 = shalt.err (!%p254_p4)
}
  0x2a   :  { %s258_s20 = scalar_lea.vmem %s42_s11, 16  ;;  %s262_s0 = scalar_lea.vmem %s42_s11, 32 }
  0x2b   :  { %p259_p5 = scmp.ne.s32.totalorder %s42_s11, %s258_s20  ;;  %p263_p6 = scmp.lt.s32.totalorder %s42_s11, %s42_s11 }
  0x2c   :  { %p264_p7 = scmp.lt.s32.totalorder %s262_s0, %s258_s20 }
  0x2e   :  { %p265_p8 = por %p264_p7, %p263_p6 }
  0x30   :  { %p266_p9 = pnand %p265_p8, %p259_p5 }
  0x32   :  { %269 = shalt.err (!%p266_p9)
}
  0x33   :  { %44 = dma.hbm_to_vmem [thread:$0]  %s390_s2, 16, %s42_s11, [#allocation6]  }
  0x34   :  { %292 = dma.done.wait [#allocation3], 256  }
  0x35   :  { %293 = vsyncadd [#allocation3], 4294967040 }
  0x36   :  { %294 = dma.done.wait [#allocation6], 528  }
  0x37   :  { %295 = vsyncadd [#allocation6], 4294966768  ;;  %vm67_vm0 = vcmask 261120   ;;  %v56_v0 = vld [vmem:[#allocation5] sm:$0xff]  ;;  %v57_v1 = vld [vmem:[#allocation5 + $0x8] sm:$0xff]  ;;  %s303_s2 = smov [#allocation8]  }
  0x38   :  { %v58_v2 = vld [vmem:[#allocation5 + $0x10] sm:$0xff]  ;;  %v190_v3 = vpack.c.bf16 %v57_v1, %v56_v0  ;;  %v59_v4 = vld [vmem:[#allocation5 + $0x18] sm:$0xff]  ;;  %v170_v8 = vld [vmem:[#allocation7] ss:$0 sm:$0xff]  ;;  %s157_s22 = sshll.u32 %s303_s2, 4  ;;  %vm149_vm1 = vcmask 785408   ;;  %s158_s22 = int_to_ptr.vmem [resolvable:$true] %s157_s22 }
  0x39   :  { %v54_v5 = vld [vmem:[#allocation2] sm:$0xff]  ;;  %v194_v6 = vpack.c.bf16 %v59_v4, %v58_v2  ;;  %v55_v7 = vld [vmem:[#allocation2 + $0x8] sm:$0xff]  ;;  %s270_s23 = scalar_lea.vmem %s158_s22, 256  ;;  %p275_p11 = scmp.lt.s32.totalorder %s158_s22, %s158_s22 }
  0x3a   :  { %187 = vmatprep.mubr.msk.f32.mxu0 %vm67_vm0, %v54_v5  ;;  %191 = vmatprep.subr.bf16.mxu0 %v190_v3  ;;  %p271_p10 = scmp.ne.s32.totalorder %s158_s22, %s270_s23  ;;  %p276_p12 = scmp.lt.s32.totalorder %s270_s23, %s270_s23 }
  0x3b   :  { %193 = vmatpush3.bf16.msra.mxu0 %v190_v3 }
  0x3c   :  { %195 = vmatprep.subr.bf16.mxu0 %v194_v6  ;;  %p277_p13 = por %p276_p12, %p275_p11 }
  0x3e   :  { %p278_p0 = pnand %p277_p13, %p271_p10 }
  0x3f   :  { %197 = vmatpush3.bf16.msra.mxu0 %v194_v6 }
  0x42   :  { %188 = vmatmul.mubr.msk.f32.vlgmr.msra.gmra.mrb[0].mxu0 %vm67_vm0, %v55_v7 }
 0x115   :  { %v189_v9 = vpop.f32.mrb[0].mxu0 }
 0x116   :  { %v146_v10 = vadd.f32 %v189_v9, %v170_v8  ;;  %v140_v11 = vpop.f32.mrb[1].mxu0 }
 0x117   :  { %v141_v12 = vadd.f32 %v170_v8, %v140_v11 }
 0x118   :  { %151 = vst.msk [vmem:[#allocation8 + $0x8] sm:$0xff] %vm149_vm1, %v146_v10 }
 0x119   :  { %150 = vst.msk [vmem:[#allocation8] sm:$0xff] %vm149_vm1, %v141_v12 }
 0x11a   :  { %281 = shalt.err (!%p278_p0)
}
 0x11b   :  { %s282_s28 = scalar_lea.hbm %s391_s3, 256 }
 0x11c   :  { %p283_p1 = scmp.ne.s32.totalorder %s391_s3, %s282_s28  ;;  %p286_p2 = scmp.lt.u32.totalorder %s282_s28, %s391_s3 }
 0x11e   :  { %p288_p3 = pnand %p286_p2, %p283_p1 }
 0x120   :  { %291 = shalt.err (!%p288_p3)
}
 0x121   :  { %163 = dma.vmem_to_hbm [thread:$0]  %s158_s22, 256, %s391_s3, [#allocation4], %s300_s24, %s300_s24, %s301_s25  }
 0x122   :  { %296 = dma.done.wait [#allocation4], 256  }
 0x123   :  { %297 = vsyncadd [#allocation4], 4294967040 }
 0x124   :  { %167 = vsyncpa [#allocation3], 1 }
 0x125   :  { %168 = vsyncpa [#allocation6], 1 }
 0x126   :  { %169 = vsyncpa [#allocation4], 1 }

// kernel: causal_self_attention.4
= control target key start
LH: loop header
LB: loop body
LE: loop exit
PB: predicated region body
PF: predicated region fallthrough
CT: control target
= control target key end

     0   :  { %s1274_s0 = inlined_call_operand.hbm [shape: f32[8,8,8], index: 0, kind: input, shape index: {}]   ;;  %s1275_s1 = inlined_call_operand.hbm [shape: f32[8,8,8], index: 1, kind: input, shape index: {}]   ;;  %s1276_s2 = inlined_call_operand.hbm [shape: f32[8,8,8], index: 2, kind: input, shape index: {}]   ;;  %s1277_s3 = inlined_call_operand.hbm [shape: f32[8,8,8], index: 3, kind: output, shape index: {}]  }
   0x1   :  { %1283 = sst [smem:[#allocation18_spill]] %s1275_s1 }
   0x2   :  { %8 = vsyncpa [#allocation6], 0 }
   0x3   :  { %10 = vsyncpa [#allocation6 + $0x1], 0 }
   0x4   :  { %11 = vsyncpa [#allocation9], 0 }
   0x5   :  { %13 = vsyncpa [#allocation9 + $0x1], 0 }
   0x6   :  { %14 = vsyncpa [#allocation7], 0 }
   0x7   :  { %16 = vsyncpa [#allocation7 + $0x1], 0  ;;  %s1000_s12 = smov 0   ;;  %s1002_s13 = smov 0  }
   0x8   :  { %s1004_s14 = smov 0   ;;  %s1006_s15 = smov 0  }
   0x9   :  { %s1008_s16 = smov 0   ;;  %s1010_s17 = smov 0  }
   0xa LB: > { %1284 = sst [smem:[#allocation15_spill]] %s966_s16  ;;  %s1031_s18 = sadd.s32 4294967295, %s970_s17   ;;  %s970_s17 = sphi %s1010_s17, %s22_s17   ;;  %s966_s16 = sphi %s1008_s16, %s1304_s16   ;;  %s962_s15 = sphi %s1006_s15, %s1303_s15   ;;  %s958_s14 = sphi %s1004_s14, %s1307_s14   ;;  %s954_s13 = sphi %s1002_s13, %s1306_s13   ;;  %s950_s12 = sphi %s1000_s12, %s1305_s12  }
   0xb   : > { %s675_s19 = sadd.s32 4294967294, %s970_s17   ;;  %s41_s20 = sadd.s32 1, %s966_s16 }
   0xc   : > { %s50_s21 = sadd.s32 1, %s958_s14  ;;  %p43_p0 = scmp.ge.s32.totalorder %s41_s20, 8 }
   0xd   : > { %p57_p1 = scmp.ne.s32.totalorder %s958_s14, %s954_s13  ;;  %p58_p2 = scmp.eq.s32.totalorder %s970_s17, 0 }
   0xe   : > { %p63_p3 = scmp.ne.s32.totalorder %s954_s13, %s950_s12  ;;  %s1309_s20 = smov (%p43_p0, %s41_s20), 0 }
   0xf   : > { %1285 = sst [smem:[#allocation16_spill]] %s1309_s20  ;;  %p1043_p4 = por %p58_p2, %p57_p1 }
  0x10   : > { %p64_p5 = scmp.eq.s32.totalorder %s1031_s18, 0  ;;  %s45_s23 = ssub.s32 %s966_s16, %s1309_s20 }
  0x11   : > { %p153_p6 = scmp.eq.s32.totalorder %s1031_s18, 7  ;;  %p48_p7 = scmp.eq.s32.totalorder %s45_s23, 0 }
  0x12   : > { %p1051_p8 = por %p64_p5, %p63_p3  ;;  %p159_p10 = scmp.eq.s32.totalorder %s675_s19, 7 }
  0x13   : > { %p1055_p9 = por %p153_p6, %p57_p1  ;;  %p732_p12 = scmp.lt.s32.totalorder %s970_s17, 8 }
  0x14   : > { %s1287_s24 = scalar_select %p1051_p8, 1, 0 }
  0x15   : > { %s1288_s25 = scalar_select %p1055_p9, 1, 0 }
  0x16   : > { %s1060_s26 = scalar_select %p48_p7, %s958_s14, %s50_s21  }
  0x17   : > { %p1062_p11 = por %p159_p10, %p63_p3  ;;  %s179_s28 = sand.u32 1, %s958_s14  }
  0x18   : > { %1289 = sst [smem:[#allocation17_spill]] %s1060_s26  ;;  %s1070_s29 = sshll.u32 %s179_s28, 3 }
  0x19   : > { %s1290_s27 = scalar_select %p1062_p11, 1, 0 }
  0x1a   : > { %s1073_s30 = sshll.u32 %s966_s16, 7  ;;  %p1077_p13 = pnand %p732_p12, %p1043_p4 }
  0x1b   : > { %s198_s5 = sand.u32 1, %s970_s17   ;;  %s1292_s1 = sld [smem:[#allocation18_spill]] }
  0x1c   : > { %s1291_s4 = scalar_select %p1077_p13, 1, 0 }
  0x1d   : > { %s202_s9 = scalar_lea.vmem [#allocation8], %s1070_s29  ;;  %s1093_s11 = scalar_lea.sflag [#allocation9], %s198_s5 }
  0x1e   : > { %s212_s10 = sshll.u32 %s202_s9, 4  ;;  %p1099_p3 = pneg %p1077_p13  ;;  %s1090_s10 = int_to_ptr.vmem [resolvable:$true] %s212_s10 }
  0x21   : > { %s1086_s8 = scalar_lea.hbm %s1292_s1, %s1073_s30  ;;  %s799_s6 = scalar_lea.hbm %s1292_s1, 1024 }
  0x22   : > { %s794_s19 = scalar_lea.hbm %s1086_s8, 128  ;;  %p800_p6 = scmp.lt.u32.totalorder %s1086_s8, %s1292_s1 }
  0x23   : > { %p795_p2 = scmp.ne.s32.totalorder %s1086_s8, %s794_s19  ;;  %p801_p7 = scmp.lt.u32.totalorder %s799_s6, %s794_s19 }
  0x24   : > { %p803_p12 = scmp.lt.u32.totalorder %s794_s19, %s1086_s8 }
  0x25   : > { %p797_p4 = pnand %p1099_p3, %p795_p2  ;;  %p802_p10 = por %p801_p7, %p800_p6 }
  0x27   : > { %p798_p5 = pneg %p797_p4  ;;  %p804_p0 = por %p803_p12, %p802_p10 }
  0x29   : > { %p805_p1 = pnand %p804_p0, %p798_p5 }
  0x2b   : > { %808 = shalt.err (!%p805_p1)
}
  0x2c   : > { %s809_s5 = scalar_lea.vmem %s1090_s10, 128  ;;  %s972_s22 = smov [#allocation8]  }
  0x2d   : > { %p810_p2 = scmp.ne.s32.totalorder %s1090_s10, %s809_s5  ;;  %s814_s23 = sshll.u32 %s972_s22, 4  ;;  %s815_s23 = int_to_ptr.vmem [resolvable:$false] %s814_s23 }
  0x2e   : > { %s816_s7 = scalar_lea.vmem %s815_s23, 256  ;;  %p817_p9 = scmp.lt.s32.totalorder %s1090_s10, %s815_s23 }
  0x2f   : > { %p812_p4 = pnand %p810_p2, %p1099_p3  ;;  %p818_p8 = scmp.lt.s32.totalorder %s816_s7, %s809_s5 }
  0x31   : > { %p813_p11 = pneg %p812_p4  ;;  %p819_p6 = por %p818_p8, %p817_p9 }
  0x33   : > { %p820_p7 = pnand %p819_p6, %p813_p11 }
  0x35   : > { %823 = shalt.err (!%p820_p7)
}
  0x36   : > { %724 = dma.hbm_to_vmem [thread:$0]  (!%p1077_p13), %s1086_s8, 128, %s1090_s10, %s1093_s11  }
  0x37   : > { %p1294_p0 = scmp.lt.s32.totalorder %s970_s17, 9  ;;  %p1295_p1 = scmp.ge.s32.totalorder %s970_s17, 1 }
  0x38   : > { %s1135_s5 = scalar_lea.hbm %s1274_s0, %s1073_s30  ;;  %s183_s22 = scalar_lea.vmem [#allocation5], %s1070_s29 }
  0x39   : > { %p1127_p5 = pnand %p1295_p1, %p1294_p0  ;;  %s191_s23 = sshll.u32 %s183_s22, 4  ;;  %s1138_s23 = int_to_ptr.vmem [resolvable:$true] %s191_s23 }
  0x3a   : > { %s1144_s7 = scalar_lea.hbm %s1276_s2, %s1073_s30  ;;  %s180_s1 = scalar_lea.sflag [#allocation6], %s179_s28 }
  0x3b   : > { %s1296_s19 = scalar_select %p1127_p5, 1, 0 }
  0x3c   : > { %s824_s20 = scalar_lea.hbm %s1135_s5, 128  ;;  %s829_s16 = scalar_lea.hbm %s1274_s0, 1024 }
  0x3d   : > { %p825_p8 = scmp.ne.s32.totalorder %s1135_s5, %s824_s20  ;;  %p830_p10 = scmp.lt.u32.totalorder %s1135_s5, %s1274_s0 }
  0x3e   : > { %p831_p12 = scmp.lt.u32.totalorder %s829_s16, %s824_s20  ;;  %p833_p4 = scmp.lt.u32.totalorder %s824_s20, %s1135_s5 }
  0x3f   : > { %p827_p9 = pnand %p825_p8, %p1099_p3 }
  0x40   : > { %p832_p2 = por %p831_p12, %p830_p10 }
  0x41   : > { %p828_p11 = pneg %p827_p9 }
  0x42   : > { %p834_p6 = por %p833_p4, %p832_p2 }
  0x44   : > { %p835_p7 = pnand %p834_p6, %p828_p11 }
  0x46   : > { %838 = shalt.err (!%p835_p7)
}
  0x47   : > { %s839_s28 = scalar_lea.vmem %s1138_s23, 128  ;;  %s973_s30 = smov [#allocation5]  }
  0x48   : > { %p840_p0 = scmp.ne.s32.totalorder %s1138_s23, %s839_s28  ;;  %s844_s8 = sshll.u32 %s973_s30, 4  ;;  %s845_s8 = int_to_ptr.vmem [resolvable:$false] %s844_s8 }
  0x49   : > { %s846_s26 = scalar_lea.vmem %s845_s8, 256  ;;  %p847_p9 = scmp.lt.s32.totalorder %s1138_s23, %s845_s8 }
  0x4a   : > { %p842_p1 = pnand %p840_p0, %p1099_p3  ;;  %p848_p5 = scmp.lt.s32.totalorder %s846_s26, %s839_s28 }
  0x4c   : > { %p843_p8 = pneg %p842_p1  ;;  %p849_p10 = por %p848_p5, %p847_p9 }
  0x4e   : > { %p850_p12 = pnand %p849_p10, %p843_p8 }
  0x50   : > { %853 = shalt.err (!%p850_p12)
}
  0x51   : > { %721 = dma.hbm_to_vmem [thread:$0]  (!%p1077_p13), %s1135_s5, 128, %s1138_s23, %s180_s1  }
  0x52   : > { %s223_s16 = scalar_lea.vmem [#allocation10], %s1070_s29  ;;  %s854_s10 = scalar_lea.hbm %s1144_s7, 128 }
  0x53   : > { %s233_s20 = sshll.u32 %s223_s16, 4  ;;  %p855_p11 = scmp.ne.s32.totalorder %s1144_s7, %s854_s10  ;;  %s234_s20 = int_to_ptr.vmem [resolvable:$true] %s233_s20 }
  0x54   : > { %s859_s22 = scalar_lea.hbm %s1276_s2, 1024  ;;  %p860_p4 = scmp.lt.u32.totalorder %s1144_s7, %s1276_s2 }
  0x55   : > { %p857_p5 = pnand %p855_p11, %p1099_p3  ;;  %p861_p6 = scmp.lt.u32.totalorder %s859_s22, %s854_s10 }
  0x56   : > { %p863_p0 = scmp.lt.u32.totalorder %s854_s10, %s1144_s7 }
  0x57   : > { %p858_p2 = pneg %p857_p5  ;;  %p862_p7 = por %p861_p6, %p860_p4 }
  0x59   : > { %p864_p1 = por %p863_p0, %p862_p7 }
  0x5b   : > { %p865_p8 = pnand %p864_p1, %p858_p2 }
  0x5d   : > { %868 = shalt.err (!%p865_p8)
}
  0x5e   : > { %s869_s1 = scalar_lea.vmem %s234_s20, 128  ;;  %s974_s29 = smov [#allocation10]  }
  0x5f   : > { %p870_p9 = scmp.ne.s32.totalorder %s234_s20, %s869_s1  ;;  %s874_s5 = sshll.u32 %s974_s29, 4  ;;  %s875_s5 = int_to_ptr.vmem [resolvable:$false] %s874_s5 }
  0x60   : > { %s876_s23 = scalar_lea.vmem %s875_s5, 256  ;;  %p877_p11 = scmp.lt.s32.totalorder %s234_s20, %s875_s5 }
  0x61   : > { %p872_p10 = pnand %p870_p9, %p1099_p3  ;;  %p878_p5 = scmp.lt.s32.totalorder %s876_s23, %s869_s1 }
  0x63   : > { %p873_p12 = pneg %p872_p10  ;;  %p879_p13 = por %p878_p5, %p877_p11 }
  0x65   : > { %p880_p4 = pnand %p879_p13, %p873_p12 }
  0x67   : > { %883 = shalt.err (!%p880_p4)
}
  0x68   : > { %p1297_p6 = scmp.ne.s32.totalorder %s1291_s4, 0  ;;  %p1298_p2 = scmp.ne.s32.totalorder %s1296_s19, 0 }
  0x69   : > { %s1191_s21 = sand.u32 (!%p1298_p2), 1, %s954_s13   ;;  %p1299_p13 = scmp.ne.s32.totalorder (!%p1298_p2), %s1287_s24, 0 }
  0x6a   : > { %727 = dma.hbm_to_vmem [thread:$0]  (!%p1297_p6), %s1144_s7, 128, %s234_s20, %s1093_s11  }
  0x6b   : > { %242 = sbr.rel (%p1298_p2) target bundleno = 935 (0x3a7), region = 32  ;;  %s1194_s8 = sshll.u32 (!%p1298_p2), %s1191_s21, 3 }
  0x6c   : > { %s245_s26 = scalar_lea.sflag (!%p1298_p2), [#allocation6], %s1191_s21  ;;  %s248_s16 = scalar_lea.vmem (!%p1298_p2), [#allocation5], %s1194_s8 }
  0x72   : > { %937 = dma.done.wait (%p1299_p13), %s245_s26, 128  }
  0x73   : > { %939 = vsyncadd (%p1299_p13), %s245_s26, 4294967168  ;;  %s253_s4 = sand.u32 1, %s1031_s18   ;;  %s257_s19 = scalar_lea.vmem [#allocation8], %s1194_s8 }
  0x74   : > { %s254_s11 = scalar_lea.sflag [#allocation9], %s253_s4 }
  0x75   : > { %941 = dma.done.wait (%p1299_p13), %s254_s11, 256  }
  0x76   : > { %943 = vsyncadd (%p1299_p13), %s254_s11, 4294967040  ;;  %vm310_vm0 = vcmask 64512   ;;  %v975_v0 = vmov 0.0   ;;  %vm976_vm1 = vmmov 0   ;;  %v317_v1 = vld [vmem:[%s257_s19] sm:$0xff]  ;;  %v316_v2 = vld [vmem:[%s248_s16] sm:$0xff]  ;;  %v398_v4 = vlaneseq }
  0x77   : > { %700 = vmatprep.subr.mxu0 %v975_v0  ;;  %311 = vst.msk [vmem:[#allocation4] sm:$0xff] %vm310_vm0, %v975_v0  ;;  %702 = vmatprep.mubr.msk.f32.mxu0 %vm976_vm1, %v975_v0  ;;  %vm307_vm2 = vcmask 7168   ;;  %v977_v3 = vmov -inf   ;;  %v978_v12 = vmov 0   ;;  %s266_s18 = scalar_lea.vmem [#allocation10], %s1194_s8  ;;  %s693_s24 = sshll.u32 %s962_s15, 7 }
  0x78   : > { %705 = vmatprep.subr.mxu1 %v975_v0  ;;  %707 = vmatprep.mubr.msk.f32.mxu1 %vm976_vm1, %v975_v0  ;;  %308 = vst.msk [vmem:[#allocation2] sm:$0xff] %vm307_vm2, %v977_v3  ;;  %309 = vst.msk [vmem:[#allocation3] sm:$0xff] %vm307_vm2, %v975_v0  ;;  %v399_v5 = vshrl.u32 %v398_v4, 7  ;;  %v404_v6 = vand.u32 127, %v398_v4  ;;  %v318_v17 = vld [vmem:[%s266_s18] sm:$0xff]  ;;  %s298_s7 = scalar_lea.vmem [#allocation11], %s1194_s8  ;;  %s1225_s9 = scalar_lea.hbm %s1277_s3, %s693_s24 }
  0x79   : > { %701 = vmatpush3.xpose.msk.msra.mxu0 %vm310_vm0, %v317_v1  ;;  %786 = vset.pattern.permute.xlu0 %v978_v12  ;;  %s546_s20 = sshll.u32 %s298_s7, 4  ;;  %s532_s22 = scalar_lea.sflag [#allocation7], %s1191_s21  ;;  %s1227_s20 = int_to_ptr.vmem [resolvable:$true] %s546_s20 }
  0x7a   : > { %vm407_vm3 = vcmp.le.s32.totalorder %v404_v6, %v399_v5  ;;  %787 = vset.pattern.permute.xlu1 %v978_v12  ;;  %706 = vmatpush3.msra.mxu1 %v318_v17  ;;  %s884_s28 = scalar_lea.vmem %s1227_s20, 128  ;;  %p1300_p7 = scmp.ne.s32.totalorder %s1288_s25, 0 }
  0x7b   : > { %p885_p3 = scmp.ne.s32.totalorder %s1227_s20, %s884_s28  ;;  %s979_s15 = smov [#allocation11]  }
  0x7c   : > { %703 = vmatmul.mubr.msk.f32.vlgmr.msra.gmra.mrb[0].mxu0 %vm310_vm0, %v316_v2  ;;  %s888_s30 = sshll.u32 %s979_s15, 4  ;;  %s889_s30 = int_to_ptr.vmem [resolvable:$false] %s888_s30 }
  0x7d   : > { %p886_p0 = pnand %p885_p3, %p1300_p7  ;;  %s890_s1 = scalar_lea.vmem %s889_s30, 256 }
  0x7e   : > { %v433_v31 = vld [vmem:[#allocation4] sm:$0xff]  ;;  %p891_p8 = scmp.lt.s32.totalorder %s1227_s20, %s889_s30  ;;  %p892_p9 = scmp.lt.s32.totalorder %s890_s1, %s884_s28 }
  0x7f   : > { %v409_v13 = vld [vmem:[#allocation2] sm:$0xff]  ;;  %v425_v25 = vld [vmem:[#allocation3] sm:$0xff]  ;;  %p887_p1 = pneg %p886_p0 }
  0x80   : > { %p893_p10 = por %p892_p9, %p891_p8 }
  0x82   : > { %p894_p12 = pnand %p893_p10, %p887_p1 }
 0x14f   : > { %v392_v7 = vpop.f32.mrb[0].mxu0 }
 0x150   : > { %v396_v8 = vmul.f32 0.35355338, %v392_v7  ;;  %v704_v9 = vpop.f32.mrb[1].mxu0 }
 0x152   : > { %v408_v10 = vsel %vm407_vm3, %v396_v8, -inf }
 0x153   : > { %v410_v11 = vsel %vm310_vm0, %v408_v10, -inf }
 0x154   : > { %411 = vmax.xlane.f32.xlu0 %v410_v11 }
 0x1e1   : > { %v412_v14 = vpop.xlane.xlu0 %411 }
 0x1e2   : > { %v413_v15 = vmax.f32 %v409_v13, %v412_v14 }
 0x1e4   : > { %v414_v16 = vsub.f32 %v409_v13, %v413_v15  ;;  %515 = vst.msk [vmem:[#allocation2] sm:$0xff] %vm307_vm2, %v413_v15  ;;  %419 = vperm.xlu0 %786, %v413_v15  }
 0x1e6   : > { %v415_v23 = vmul.f32 1.442695, %v414_v16 }
 0x263   : > { %v420_v18 = vpop.permute.xlu0 %419 }
 0x264   : > { %v422_v19 = vsub.f32 %v408_v10, %v420_v18 }
 0x266   : > { %v423_v20 = vmul.f32 1.442695, %v422_v19 }
 0x268   : > { %788 = vpow2.f32 %v423_v20 }
 0x269   : > { %790 = vpow2.f32 %v415_v23 }
 0x272   : > { %v789_v21 = vpop.eup %788 }
 0x273   : > { %708 = vmatmul.mubr.msk.f32.vlgmr.msra.gmra.mrb[0].mxu1 %vm310_vm0, %v789_v21  ;;  %v427_v22 = vsel %vm310_vm0, %v789_v21, 0.0  ;;  %v791_v24 = vpop.eup %790 }
 0x274   : > { %428 = vadd.xlane.f32.xlu1 %v427_v22  ;;  %v426_v26 = vmul.f32 %v791_v24, %v425_v25 }
 0x285   : > { %436 = vperm.xlu1 %787, %v791_v24  }
 0x301   : > { %v429_v27 = vpop.xlane.xlu1 %428 }
 0x302   : > { %v430_v28 = vadd.f32 %v429_v27, %v426_v26 }
 0x304   : > { %432 = vst.msk [vmem:[#allocation3] sm:$0xff] %vm307_vm2, %v430_v28 }
 0x305   : > { %v437_v32 = vpop.permute.xlu1 %436 }
 0x306   : > { %v439_v33 = vmul.f32 %v437_v32, %v433_v31 }
 0x30b   : > { %v520_v29 = vld [vmem:[#allocation3] sm:$0xff] }
 0x30c   : > { %792 = vrcp.f32 %v520_v29 }
 0x316   : > { %v793_v30 = vpop.eup %792 }
 0x317   : > { %525 = vperm.xlu1 %787, %v793_v30  }
 0x346   : > { %v509_v34 = vpop.f32.mrb[0].mxu1 }
 0x347   : > { %v513_v35 = vadd.f32 %v509_v34, %v439_v33  ;;  %v709_v36 = vpop.f32.mrb[1].mxu1 }
 0x349   : > { %514 = vst.msk [vmem:[#allocation4] sm:$0xff] %vm310_vm0, %v513_v35 }
 0x350   : > { %v522_v37 = vld [vmem:[#allocation4] sm:$0xff] }
 0x396   : > { %v526_v38 = vpop.permute.xlu1 %525 }
 0x397   : > { %v528_v39 = vmul.f32 %v526_v38, %v522_v37 }
 0x399   : > { %530 = vst.msk [vmem:[%s298_s7] sm:$0xff] %vm310_vm0, %v528_v39 }
 0x39a   : > { %897 = shalt.err (!%p894_p12)
}
 0x39b   : > { %s898_s29 = scalar_lea.hbm %s1225_s9, 128  ;;  %s902_s21 = scalar_lea.hbm %s1277_s3, 1024 }
 0x39c   : > { %p899_p11 = scmp.ne.s32.totalorder %s1225_s9, %s898_s29  ;;  %p903_p6 = scmp.lt.u32.totalorder %s1225_s9, %s1277_s3 }
 0x39d   : > { %p904_p2 = scmp.lt.u32.totalorder %s902_s21, %s898_s29  ;;  %p906_p3 = scmp.lt.u32.totalorder %s898_s29, %s1225_s9 }
 0x39e   : > { %p900_p5 = pnand %p899_p11, %p1300_p7 }
 0x39f   : > { %p905_p13 = por %p904_p2, %p903_p6 }
 0x3a0   : > { %p901_p4 = pneg %p900_p5 }
 0x3a1   : > { %p907_p0 = por %p906_p3, %p905_p13 }
 0x3a3   : > { %p908_p1 = pnand %p907_p0, %p901_p4 }
 0x3a5   : > { %911 = shalt.err (!%p908_p1)
}
 0x3a6   : > { %716 = dma.vmem_to_hbm [thread:$0]  (%p1300_p7), %s1227_s20, 128, %s1225_s9, %s532_s22  }
 0x3a7 PF: > { %p733_p8 = scmp.ge.s32.totalorder %s970_s17, 2  ;;  %s558_s16 = sand.u32 1, %s950_s12  }
 0x3a8   : > { %p1301_p9 = scmp.ne.s32.totalorder %s1290_s27, 0  ;;  %s559_s4 = scalar_lea.sflag [#allocation7], %s558_s16 }
 0x3aa   : > { %p729_p10 = pnand %p733_p8, %p1301_p9 }
 0x3ac   : > { %945 = dma.done.wait (!%p729_p10), %s559_s4, 128  }
 0x3ad   : > { %947 = vsyncadd (!%p729_p10), %s559_s4, 4294967168  ;;  %s22_s17 = sadd.s32 1, %s970_s17   ;;  %s1302_s25 = sld [smem:[#allocation17_spill]] }
 0x3ae   : > { %p19_p12 = scmp.ge.s32.totalorder %s22_s17, 10   ;;  %s1303_s15 = sld [smem:[#allocation15_spill]] }
 0x3af   : > { %s1304_s16 = sld [smem:[#allocation16_spill]]  ;;  %s1305_s12 = smov %s954_s13 }
 0x3b0   : > { %s1306_s13 = smov %s958_s14  ;;  %21 = sbr.rel (!%p19_p12) target bundleno = 10 (0xa), region = 113 }
 0x3b3   : > { %s1307_s14 = smov %s1302_s25 }
 0x3b7   :  { %564 = vsyncpa [#allocation6], 1 }
 0x3b8   :  { %566 = vsyncpa [#allocation6 + $0x1], 1 }
 0x3b9   :  { %567 = vsyncpa [#allocation9], 1 }
 0x3ba   :  { %569 = vsyncpa [#allocation9 + $0x1], 1 }
 0x3bb   :  { %570 = vsyncpa [#allocation7], 1 }
 0x3bc   :  { %572 = vsyncpa [#allocation7 + $0x1], 1 }

</bundles_post_ra>
